<compile_context>
chip_gen: v7x
topology: tpu7x:2x2x1
jax: 0.10.0
libtpu: 0.0.40
codegen_flags: <defaults>
</compile_context>

<pallas_src>
import functools
import math

import jax
import jax.numpy as jnp
import numpy as np
from jax.experimental import pallas as pl
from jax.experimental.pallas import tpu as pltpu

LN_EPS = 1e-5  # PyTorch nn.LayerNorm default eps

# Single bf16 MXU pass with f32 accumulation for the conv contraction
# (HIGHEST would emulate f32 in ~6 passes — see perf review).
CONV_DOT_PRECISION = jax.lax.Precision.DEFAULT
# LayerNorm statistics keep HIGHEST: the one-hot broadcast-back matmul is only
# exact if the f32 stats are preserved (do NOT lower this one).
STATS_DOT_PRECISION = jax.lax.Precision.HIGHEST


def conv1d_ln_kernel(x_ref, aux_ref, ssum_ref, sbcast_ref, w_ref, b_ref, o_ref,
                     *, offsets):
    """One grid step: `nb` batch segments folded along the lane axis.

    x_ref:      (C_in,  nb*L)   folded input block (batch folded into lanes)
    aux_ref:    (8k,    nb*L)   grid-invariant slab: row0 gamma, row1 beta,
                                rows 2..2+K-1 per-tap boundary masks (rest 0)
    ssum_ref:   (nb*L,  nb)     one-hot per-segment sum matrix (grid-invariant)
    sbcast_ref: (nb,    nb*L)   one-hot broadcast matrix, pre-scaled by 1/L
    w_ref:      (C_out, K*C_in) conv taps concatenated along the C_in axis
    b_ref:      (C_out, 1)      conv bias
    o_ref:      (C_out, nb*L)   folded, lane-dense output block
    """
    x = x_ref[...]                                           # (C_in, B), f32
    c_in, bcols = x.shape
    aux = aux_ref[...]                                       # (8k, B)
    gamma = aux[0:1, :]
    beta = aux[1:2, :]

    # ---- LayerNorm over each length-L segment (last axis of the NCL tensor) ----
    # Per-segment sums of [x; x*x] + broadcast-back via hoisted one-hot matmuls
    # (constant index_map operands: DMA'd once, stay resident in VMEM).
    stacked = jnp.concatenate([x, x * x], axis=0)            # (2*C_in, B)
    seg_sums = jnp.dot(stacked, ssum_ref[...],
                       preferred_element_type=jnp.float32,
                       precision=STATS_DOT_PRECISION)        # (2*C_in, nb)
    stats = jnp.dot(seg_sums, sbcast_ref[...],               # sbcast already * 1/L
                    preferred_element_type=jnp.float32,
                    precision=STATS_DOT_PRECISION)           # (2*C_in, B)
    mean = stats[:c_in]
    ex2 = stats[c_in:]
    # TODO(synk): E[x^2]-mean^2 cancels catastrophically for large-|mean|
    # activations; switch to a centered second reduction if that ever matters.
    var = ex2 - mean * mean
    x_ln = (x - mean) * jax.lax.rsqrt(var + LN_EPS) * gamma + beta   # (C_in, B)

    # ---- Conv1d taps: XLU roll + precomputed boundary mask (no shift matmul) ----
    pieces = []
    for k, off in enumerate(offsets):
        if off == 0:
            pieces.append(x_ln)
        else:
            # piece[t] = x_ln[t + off] within its own segment, else 0
            rolled = pltpu.roll(x_ln, shift=(-off) % bcols, axis=1)
            pieces.append(rolled * aux[2 + k:3 + k, :])
    x_cat = jnp.concatenate(pieces, axis=0)                  # (K*C_in, B)

    # ---- single fused MXU matmul over all taps, plus bias ----
    # M=C_out and K=K*C_in badly under-fill the MXU; the wide lane block
    # (bcols) is what streams many columns per weight load.
    out = jnp.dot(w_ref[...], x_cat,
                  preferred_element_type=jnp.float32,
                  precision=CONV_DOT_PRECISION) + b_ref[...]
    o_ref[...] = out.astype(o_ref.dtype)


def _pick_batch_block(n, seg_len, *, lane_cap=16384, aux_budget_bytes=2 << 20):
    """Number of batch segments folded into the lane axis per grid step.

    Per-lane VMEM for x/out is only ~(c_in + c_out)*4 B, so the lane block is
    essentially free; the binding constraint is the hoisted one-hot segment
    matrices, (bcols, nb) + (nb, bcols) f32 with nb = bcols/L.  Cap each at
    `aux_budget_bytes` and otherwise take the largest admissible block
    (grid=1 whenever N*L fits).  A 2-way "parallel" split (v7x megacore) is
    only taken when each step still keeps >= 512 lanes; on single-TC v5e/v6e
    the grid is a serial loop, so at >=512 lanes per step the one extra step
    is in the noise and below that we never split.
    """
    cap_from_aux = int(math.sqrt(aux_budget_bytes / 4 * seg_len))
    max_lanes = max(seg_len, min(lane_cap, cap_from_aux))
    divisors = [d for d in range(1, n + 1) if n % d == 0]
    admissible = [d for d in divisors if d == n or (d * seg_len) % 128 == 0]
    capped = [d for d in admissible if d * seg_len <= max_lanes]
    cands = capped if capped else [min(admissible)]
    nb = max(cands)
    if n // nb < 2:
        two_step = [d for d in cands if n // d >= 2 and d * seg_len >= 512]
        if two_step:
            nb = max(two_step)
    return nb


def conv1d_forward(x, params, *, dilation=1):
    """LayerNorm(in_channels) followed by Conv1d(in_channels, out_channels, K,
    dilation, padding=(K-1)*dilation//2) on an NCL tensor (Pallas TPU)."""
    n, c_in, length = x.shape
    assert length == c_in, (
        "nn.LayerNorm(in_channels) on an NCL tensor requires length == in_channels")
    gamma, beta, w, b = params["gamma"], params["beta"], params["weight"], params["bias"]
    c_out, c_in_w, ksize = w.shape
    assert c_in_w == c_in
    pad = (ksize - 1) * dilation // 2
    l_out = length + 2 * pad - dilation * (ksize - 1)
    offsets = tuple(kk * dilation - pad for kk in range(ksize))

    nb = _pick_batch_block(n, length)
    bcols = nb * length
    grid = n // nb

    # glue (XLA layout plumbing): fold batch into the lane axis -> (C_in, N*L).
    # TODO(synk): at production sizes produce/consume this layout upstream (or
    # use allow_input_fusion) so the transpose doesn't cost an extra HBM pass.
    x_f = jnp.transpose(x.astype(jnp.float32), (1, 0, 2)).reshape(c_in, n * length)

    # all K taps concatenated -> a single matmul operand (C_out, K*C_in)
    w_cat = jnp.concatenate([w[:, :, kk] for kk in range(ksize)],
                            axis=1).astype(jnp.float32)
    bias2 = b.astype(jnp.float32).reshape(c_out, 1)

    # Grid-invariant aux slab (constant index_map -> fetched once, resident):
    # row 0 gamma, row 1 beta, rows 2..2+K-1 per-tap boundary masks, zero pad.
    pos = np.arange(length, dtype=np.int64)
    mask_rows = np.stack(
        [np.tile(((pos + off >= 0) & (pos + off < length)).astype(np.float32), nb)
         for off in offsets], axis=0)                                    # (K, bcols)
    gamma_t = jnp.tile(gamma.astype(jnp.float32), nb)[None, :]           # (1, bcols)
    beta_t = jnp.tile(beta.astype(jnp.float32), nb)[None, :]             # (1, bcols)
    aux_rows = 2 + ksize
    aux_pad = (-aux_rows) % 8
    aux = jnp.concatenate(
        [gamma_t, beta_t, jnp.asarray(mask_rows),
         jnp.zeros((aux_pad, bcols), jnp.float32)], axis=0)              # (8k, bcols)

    # Grid-invariant one-hot segment matrices (hoisted out of the kernel).
    sid = np.arange(bcols) // length
    ssum = (sid[:, None] == np.arange(nb)[None, :]).astype(np.float32)   # (bcols, nb)
    sbcast = ((np.arange(nb)[:, None] == sid[None, :]).astype(np.float32)
              / float(length))                                           # (nb, bcols)

    kernel = functools.partial(conv1d_ln_kernel, offsets=offsets)

    out_f = pl.pallas_call(
        kernel,
        out_shape=jax.ShapeDtypeStruct((c_out, n * length), jnp.float32),
        grid_spec=pltpu.PrefetchScalarGridSpec(
            num_scalar_prefetch=0,
            grid=(grid,),
            in_specs=[
                pl.BlockSpec((c_in, bcols), lambda i: (0, i)),              # x (folded)
                pl.BlockSpec((aux_rows + aux_pad, bcols), lambda i: (0, 0)),  # gamma/beta/masks
                pl.BlockSpec((bcols, nb), lambda i: (0, 0)),                # one-hot sum
                pl.BlockSpec((nb, bcols), lambda i: (0, 0)),                # one-hot bcast
                pl.BlockSpec((c_out, ksize * c_in), lambda i: (0, 0)),      # W (all taps)
                pl.BlockSpec((c_out, 1), lambda i: (0, 0)),                 # bias
            ],
            out_specs=pl.BlockSpec((c_out, bcols), lambda i: (0, i)),       # lane-dense
        ),
        compiler_params=pltpu.CompilerParams(
            dimension_semantics=("parallel",)),
    )(x_f, aux, jnp.asarray(ssum), jnp.asarray(sbcast), w_cat, bias2)

    # glue (XLA layout plumbing): unfold lanes back to (N, C_out, L), crop to L_out
    out = out_f.reshape(c_out, n, length).transpose(1, 0, 2)
    return out[:, :, :l_out]


def conv1d_reference(x, params, *, dilation=1):
    """Independent pure-JAX reference (LayerNorm over last axis + dilated Conv1d)."""
    gamma, beta, w, b = params["gamma"], params["beta"], params["weight"], params["bias"]
    mean = jnp.mean(x, axis=-1, keepdims=True)
    var = jnp.mean((x - mean) ** 2, axis=-1, keepdims=True)
    x_ln = (x - mean) / jnp.sqrt(var + LN_EPS) * gamma + beta

    ksize = w.shape[2]
    pad = (ksize - 1) * dilation // 2
    y = jax.lax.conv_general_dilated(
        x_ln, w,                                  # w: (C_out, C_in, K) = OIH
        window_strides=(1,),
        padding=[(pad, pad)],
        rhs_dilation=(dilation,),
        dimension_numbers=("NCH", "OIH", "NCH"),
        precision=jax.lax.Precision.HIGHEST)
    return y + b[None, :, None]


if __name__ == "__main__":
    # L == in_channels is required by the module's literal LayerNorm-on-NCL
    # semantics.  batch=32 -> one 256-lane block, grid=1 (no forced split).
    batch, in_channels, out_channels, ksize = 32, 8, 16, 3
    length = in_channels

    key = jax.random.PRNGKey(0)
    k1, k2, k3, k4, k5 = jax.random.split(key, 5)
    params = {
        "gamma": 1.0 + 0.1 * jax.random.normal(k1, (in_channels,), jnp.float32),
        "beta": 0.1 * jax.random.normal(k2, (in_channels,), jnp.float32),
        # PyTorch nn.Conv1d weight layout: (out_channels, in_channels, kernel_size)
        "weight": 0.3 * jax.random.normal(k3, (out_channels, in_channels, ksize), jnp.float32),
        "bias": 0.1 * jax.random.normal(k4, (out_channels,), jnp.float32),
    }
    x = jax.random.normal(k5, (batch, in_channels, length), jnp.float32)

    for dilation in (1, 2):
        y = jax.block_until_ready(conv1d_forward(x, params, dilation=dilation))
        y_ref = conv1d_reference(x, params, dilation=dilation)
        assert y.shape == y_ref.shape, (y.shape, y_ref.shape)
        # Tolerance relaxed vs the f32-HIGHEST version: conv matmul now runs a
        # single bf16 MXU pass with f32 accumulation (DEFAULT precision).
        np.testing.assert_allclose(np.asarray(y), np.asarray(y_ref),
                                   rtol=2e-2, atol=2e-2)

    print("KERNEL_OK")
</pallas_src>

<mosaic_0001>
module attributes {stable_mosaic.version = 11 : i64} {
  func.func @conv1d_ln_kernel(%arg0: i32, %arg1: memref<8x256xf32, #tpu.memory_space<vmem>>, %arg2: memref<8x256xf32, #tpu.memory_space<vmem>>, %arg3: memref<256x32xf32, #tpu.memory_space<vmem>>, %arg4: memref<32x256xf32, #tpu.memory_space<vmem>>, %arg5: memref<16x24xf32, #tpu.memory_space<vmem>>, %arg6: memref<16x1xf32, #tpu.memory_space<vmem>>, %arg7: memref<16x256xf32, #tpu.memory_space<vmem>>) attributes {dimension_semantics = [#tpu.dimension_semantics<parallel>], iteration_bounds = array<i64: 1>, scalar_prefetch = 0 : i64, scratch_operands = 0 : i64, tpu.core_type = #tpu.core_type<tc>, window_params = [{transform_indices = @transform_0, window_bounds = array<i64: 8, 256>}, {pipeline_mode = #tpu.pipeline_mode<synchronous>, transform_indices = @transform_1, window_bounds = array<i64: 8, 256>}, {pipeline_mode = #tpu.pipeline_mode<synchronous>, transform_indices = @transform_2, window_bounds = array<i64: 256, 32>}, {pipeline_mode = #tpu.pipeline_mode<synchronous>, transform_indices = @transform_3, window_bounds = array<i64: 32, 256>}, {pipeline_mode = #tpu.pipeline_mode<synchronous>, transform_indices = @transform_4, window_bounds = array<i64: 16, 24>}, {pipeline_mode = #tpu.pipeline_mode<synchronous>, transform_indices = @transform_5, window_bounds = array<i64: 16, 1>}, {transform_indices = @transform_6, window_bounds = array<i64: 16, 256>}]} {
    %c0 = arith.constant 0 : index
    %c0_0 = arith.constant 0 : index
    %0 = vector.load %arg1[%c0, %c0_0] : memref<8x256xf32, #tpu.memory_space<vmem>>, vector<8x256xf32>
    %c0_1 = arith.constant 0 : index
    %c0_2 = arith.constant 0 : index
    %1 = vector.load %arg2[%c0_1, %c0_2] : memref<8x256xf32, #tpu.memory_space<vmem>>, vector<8x256xf32>
    %2 = vector.extract_strided_slice %1 {offsets = [0, 0], sizes = [1, 256], strides = [1, 1]} : vector<8x256xf32> to vector<1x256xf32>
    %3 = vector.extract_strided_slice %1 {offsets = [1, 0], sizes = [1, 256], strides = [1, 1]} : vector<8x256xf32> to vector<1x256xf32>
    %4 = arith.mulf %0, %0 : vector<8x256xf32>
    %5 = tpu.concatenate %0, %4 in 0 : vector<8x256xf32>, vector<8x256xf32> -> vector<16x256xf32>
    %c0_3 = arith.constant 0 : index
    %c0_4 = arith.constant 0 : index
    %6 = vector.load %arg3[%c0_3, %c0_4] : memref<256x32xf32, #tpu.memory_space<vmem>>, vector<256x32xf32>
    %cst = arith.constant dense<0.000000e+00> : vector<16x32xf32>
    %7 = tpu.matmul %5, %6, %cst {dimension_numbers = #tpu.dot_dimension_numbers<[1], [0], [0], [1], [0, 0, 1, 1], [], []>, precision = #tpu.contract_precision<fp32>} : vector<16x256xf32>, vector<256x32xf32>, vector<16x32xf32> -> vector<16x32xf32>
    %c0_5 = arith.constant 0 : index
    %c0_6 = arith.constant 0 : index
    %8 = vector.load %arg4[%c0_5, %c0_6] : memref<32x256xf32, #tpu.memory_space<vmem>>, vector<32x256xf32>
    %cst_7 = arith.constant dense<0.000000e+00> : vector<16x256xf32>
    %9 = tpu.matmul %7, %8, %cst_7 {dimension_numbers = #tpu.dot_dimension_numbers<[1], [0], [0], [1], [0, 0, 1, 1], [], []>, precision = #tpu.contract_precision<fp32>} : vector<16x32xf32>, vector<32x256xf32>, vector<16x256xf32> -> vector<16x256xf32>
    %10 = vector.extract_strided_slice %9 {offsets = [0, 0], sizes = [8, 256], strides = [1, 1]} : vector<16x256xf32> to vector<8x256xf32>
    %11 = vector.extract_strided_slice %9 {offsets = [8, 0], sizes = [8, 256], strides = [1, 1]} : vector<16x256xf32> to vector<8x256xf32>
    %12 = arith.mulf %10, %10 : vector<8x256xf32>
    %13 = arith.subf %11, %12 : vector<8x256xf32>
    %14 = arith.subf %0, %10 : vector<8x256xf32>
    %cst_8 = arith.constant 9.99999974E-6 : f32
    %15 = vector.broadcast %cst_8 : f32 to vector<8x256xf32>
    %16 = arith.addf %13, %15 : vector<8x256xf32>
    %17 = math.rsqrt %16 : vector<8x256xf32>
    %18 = arith.mulf %14, %17 : vector<8x256xf32>
    %19 = vector.broadcast %2 : vector<1x256xf32> to vector<8x256xf32>
    %20 = arith.mulf %18, %19 : vector<8x256xf32>
    %21 = vector.broadcast %3 : vector<1x256xf32> to vector<8x256xf32>
    %22 = arith.addf %20, %21 : vector<8x256xf32>
    %c1_i32 = arith.constant 1 : i32
    %23 = tpu.dynamic_rotate %22 by %c1_i32 dim 1 : vector<8x256xf32>, i32 -> vector<8x256xf32>
    %24 = vector.extract_strided_slice %1 {offsets = [2, 0], sizes = [1, 256], strides = [1, 1]} : vector<8x256xf32> to vector<1x256xf32>
    %25 = vector.broadcast %24 : vector<1x256xf32> to vector<8x256xf32>
    %26 = arith.mulf %23, %25 : vector<8x256xf32>
    %c255_i32 = arith.constant 255 : i32
    %27 = tpu.dynamic_rotate %22 by %c255_i32 dim 1 : vector<8x256xf32>, i32 -> vector<8x256xf32>
    %28 = vector.extract_strided_slice %1 {offsets = [4, 0], sizes = [1, 256], strides = [1, 1]} : vector<8x256xf32> to vector<1x256xf32>
    %29 = vector.broadcast %28 : vector<1x256xf32> to vector<8x256xf32>
    %30 = arith.mulf %27, %29 : vector<8x256xf32>
    %31 = tpu.concatenate %26, %22, %30 in 0 : vector<8x256xf32>, vector<8x256xf32>, vector<8x256xf32> -> vector<24x256xf32>
    %c0_9 = arith.constant 0 : index
    %c0_10 = arith.constant 0 : index
    %32 = vector.load %arg5[%c0_9, %c0_10] : memref<16x24xf32, #tpu.memory_space<vmem>>, vector<16x24xf32>
    %cst_11 = arith.constant dense<0.000000e+00> : vector<16x256xf32>
    %33 = tpu.matmul %32, %31, %cst_11 {dimension_numbers = #tpu.dot_dimension_numbers<[1], [0], [0], [1], [0, 0, 1, 1], [], []>} : vector<16x24xf32>, vector<24x256xf32>, vector<16x256xf32> -> vector<16x256xf32>
    %c0_12 = arith.constant 0 : index
    %c0_13 = arith.constant 0 : index
    %34 = vector.load %arg6[%c0_12, %c0_13] : memref<16x1xf32, #tpu.memory_space<vmem>>, vector<16x1xf32>
    %35 = vector.broadcast %34 : vector<16x1xf32> to vector<16x256xf32>
    %36 = arith.addf %33, %35 : vector<16x256xf32>
    %c0_14 = arith.constant 0 : index
    %c0_15 = arith.constant 0 : index
    %37 = vector.load %arg7[%c0_14, %c0_15] : memref<16x256xf32, #tpu.memory_space<vmem>>, vector<16x256xf32>
    tpu.vector_store %arg7[%c0_14, %c0_15], %36 {strides = array<i32>} : memref<16x256xf32, #tpu.memory_space<vmem>>, vector<16x256xf32>,
    return
  }
  func.func @transform_0(%arg0: i32) -> (i32, i32) {
    %c0_i32 = arith.constant 0 : i32
    %c0_i32_0 = arith.constant 0 : i32
    return %c0_i32, %arg0 : i32, i32
  }
  func.func @transform_1(%arg0: i32) -> (i32, i32) {
    %c0_i32 = arith.constant 0 : i32
    %c0_i32_0 = arith.constant 0 : i32
    %c0_i32_1 = arith.constant 0 : i32
    return %c0_i32, %c0_i32_0 : i32, i32
  }
  func.func @transform_2(%arg0: i32) -> (i32, i32) {
    %c0_i32 = arith.constant 0 : i32
    %c0_i32_0 = arith.constant 0 : i32
    %c0_i32_1 = arith.constant 0 : i32
    return %c0_i32, %c0_i32_0 : i32, i32
  }
  func.func @transform_3(%arg0: i32) -> (i32, i32) {
    %c0_i32 = arith.constant 0 : i32
    %c0_i32_0 = arith.constant 0 : i32
    %c0_i32_1 = arith.constant 0 : i32
    return %c0_i32, %c0_i32_0 : i32, i32
  }
  func.func @transform_4(%arg0: i32) -> (i32, i32) {
    %c0_i32 = arith.constant 0 : i32
    %c0_i32_0 = arith.constant 0 : i32
    %c0_i32_1 = arith.constant 0 : i32
    return %c0_i32, %c0_i32_0 : i32, i32
  }
  func.func @transform_5(%arg0: i32) -> (i32, i32) {
    %c0_i32 = arith.constant 0 : i32
    %c0_i32_0 = arith.constant 0 : i32
    %c0_i32_1 = arith.constant 0 : i32
    return %c0_i32, %c0_i32_0 : i32, i32
  }
  func.func @transform_6(%arg0: i32) -> (i32, i32) {
    %c0_i32 = arith.constant 0 : i32
    %c0_i32_0 = arith.constant 0 : i32
    return %c0_i32, %arg0 : i32, i32
  }
}

</mosaic_0001>

<bundles_post_ra>
// kernel: tpu_custom_call.1
= control target key start
LH: loop header
LB: loop body
LE: loop exit
PB: predicated region body
PF: predicated region fallthrough
CT: control target
= control target key end

     0   :  { %s3051_s0 = inlined_call_operand.vmem [shape: f32[8,256], index: 0, kind: input, shape index: {}]   ;;  %s3052_s1 = inlined_call_operand.vmem [shape: f32[8,256], index: 1, kind: input, shape index: {}]   ;;  %s3053_s2 = inlined_call_operand.vmem [shape: f32[256,32], index: 2, kind: input, shape index: {}]   ;;  %s3054_s3 = inlined_call_operand.vmem [shape: f32[32,256], index: 3, kind: input, shape index: {}]   ;;  %s3055_s4 = inlined_call_operand.vmem [shape: f32[16,24], index: 4, kind: input, shape index: {}]   ;;  %s3056_s5 = inlined_call_operand.vmem [shape: f32[16,1], index: 5, kind: input, shape index: {}]   ;;  %s3057_s6 = inlined_call_operand.hbm [shape: f32[16,256], index: 6, kind: output, shape index: {}]  }
   0x1   :  { %v46_v0 = vld [vmem:[%s3053_s2 + $0x80] sm:$0xff]  ;;  %v47_v1 = vld [vmem:[%s3053_s2 + $0x88] sm:$0xff]  ;;  %v48_v7 = vld [vmem:[%s3053_s2 + $0x90] sm:$0xff] }
   0x2   :  { %v30_v2 = vld [vmem:[%s3053_s2] sm:$0xff]  ;;  %v111_v3 = vand.u32 4294901760, %v46_v0  ;;  %v114_v4 = vand.u32 4294901760, %v47_v1  ;;  %v31_v5 = vld [vmem:[%s3053_s2 + $0x8] sm:$0xff]  ;;  %v49_v8 = vld [vmem:[%s3053_s2 + $0x98] sm:$0xff]  ;;  %v117_v10 = vand.u32 4294901760, %v48_v7 }
   0x3   :  { %v63_v6 = vand.u32 4294901760, %v30_v2  ;;  %v66_v9 = vand.u32 4294901760, %v31_v5  ;;  %v120_v11 = vand.u32 4294901760, %v49_v8  ;;  %v32_v12 = vld [vmem:[%s3053_s2 + $0x10] sm:$0xff]  ;;  %v33_v13 = vld [vmem:[%s3053_s2 + $0x18] sm:$0xff]  ;;  %v50_v14 = vld [vmem:[%s3053_s2 + $0xa0] sm:$0xff] }
   0x4   :  { %v2373_v15 = vpack.c.bf16 %v114_v4, %v111_v3  ;;  %v2375_v16 = vsub.f32 %v46_v0, %v111_v3  ;;  %v2377_v17 = vsub.f32 %v47_v1, %v114_v4  ;;  %v51_v18 = vld [vmem:[%s3053_s2 + $0xa8] sm:$0xff]  ;;  %v34_v19 = vld [vmem:[%s3053_s2 + $0x20] sm:$0xff]  ;;  %v52_v25 = vld [vmem:[%s3053_s2 + $0xb0] sm:$0xff]  ;;  %v2400_v26 = vsub.f32 %v48_v7, %v117_v10 }
   0x5   :  { %v35_v20 = vld [vmem:[%s3053_s2 + $0x28] sm:$0xff]  ;;  %v2388_v21 = vpack.c.bf16 %v66_v9, %v63_v6  ;;  %v2390_v22 = vsub.f32 %v30_v2, %v63_v6  ;;  %v2392_v23 = vsub.f32 %v31_v5, %v66_v9  ;;  %v2394_v24 = vpack.c.bf16 %v120_v11, %v117_v10  ;;  %v53_v34 = vld [vmem:[%s3053_s2 + $0xb8] sm:$0xff]  ;;  %v36_v35 = vld [vmem:[%s3053_s2 + $0x30] sm:$0xff] }
   0x6   :  { %2004 = vmatprep.subr.bf16.mxu1 %v2373_v15  ;;  %v69_v27 = vand.u32 4294901760, %v32_v12  ;;  %v72_v28 = vand.u32 4294901760, %v33_v13  ;;  %v123_v29 = vand.u32 4294901760, %v50_v14  ;;  %v2403_v30 = vsub.f32 %v49_v8, %v120_v11  ;;  %v37_v36 = vld [vmem:[%s3053_s2 + $0x38] sm:$0xff]  ;;  %v54_v41 = vld [vmem:[%s3053_s2 + $0xc0] sm:$0xff]  ;;  %v55_v42 = vld [vmem:[%s3053_s2 + $0xc8] sm:$0xff] }
   0x7   :  { %2006 = vmatpush3.bf16.msra.mxu1 %v2388_v21  ;;  %v126_v31 = vand.u32 4294901760, %v51_v18  ;;  %v75_v32 = vand.u32 4294901760, %v34_v19  ;;  %v78_v33 = vand.u32 4294901760, %v35_v20  ;;  %v129_v40 = vand.u32 4294901760, %v52_v25  ;;  %v38_v43 = vld [vmem:[%s3053_s2 + $0x40] sm:$0xff]  ;;  %v39_v48 = vld [vmem:[%s3053_s2 + $0x48] sm:$0xff] }
   0x8   :  { %2008 = vmatprep.subr.bf16.mxu1 %v2394_v24  ;;  %v2415_v37 = vpack.c.bf16 %v72_v28, %v69_v27  ;;  %v2417_v38 = vsub.f32 %v32_v12, %v69_v27  ;;  %v2419_v39 = vsub.f32 %v33_v13, %v72_v28  ;;  %v2432_v45 = vsub.f32 %v50_v14, %v123_v29  ;;  %v56_v53 = vld [vmem:[%s3053_s2 + $0xd0] sm:$0xff]  ;;  %v57_v58 = vld [vmem:[%s3053_s2 + $0xd8] sm:$0xff]  ;;  %v58_v1 = vld [vmem:[%s3053_s2 + $0xe0] sm:$0xff] }
   0x9   :  { %v2430_v44 = vpack.c.bf16 %v126_v31, %v123_v29  ;;  %v2434_v46 = vsub.f32 %v51_v18, %v126_v31  ;;  %v2436_v47 = vpack.c.bf16 %v78_v33, %v75_v32  ;;  %v2441_v49 = vsub.f32 %v34_v19, %v75_v32  ;;  %v40_v59 = vld [vmem:[%s3053_s2 + $0x50] sm:$0xff]  ;;  %v41_v0 = vld [vmem:[%s3053_s2 + $0x58] sm:$0xff]  ;;  %v59_v2 = vld [vmem:[%s3053_s2 + $0xe8] sm:$0xff] }
   0xa   :  { %v2443_v50 = vsub.f32 %v35_v20, %v78_v33  ;;  %v132_v51 = vand.u32 4294901760, %v53_v34  ;;  %v81_v52 = vand.u32 4294901760, %v36_v35  ;;  %v84_v54 = vand.u32 4294901760, %v37_v36  ;;  %v42_v7 = vld [vmem:[%s3053_s2 + $0x60] sm:$0xff]  ;;  %v43_v8 = vld [vmem:[%s3053_s2 + $0x68] sm:$0xff] }
   0xb   :  { %3117 = vst [vmem:[#allocation5_spill] sm:$0xff] %v2430_v44  ;;  %3118 = vst [vmem:[#allocation6_spill] sm:$0xff] %v2436_v47  ;;  %2010 = vmatpush3.bf16.msra.mxu1 %v2415_v37  ;;  %v135_v55 = vand.u32 4294901760, %v54_v41  ;;  %v138_v56 = vand.u32 4294901760, %v55_v42  ;;  %v87_v57 = vand.u32 4294901760, %v38_v43  ;;  %v2458_v61 = vsub.f32 %v52_v25, %v129_v40 }
   0xc   :  { %2012 = vmatprep.subr.bf16.mxu1 %v2430_v44  ;;  %v2456_v60 = vpack.c.bf16 %v132_v51, %v129_v40  ;;  %v2460_v62 = vsub.f32 %v53_v34, %v132_v51  ;;  %v90_v63 = vand.u32 4294901760, %v39_v48  ;;  %v2471_v3 = vpack.c.bf16 %v84_v54, %v81_v52 }
   0xd   :  { %v2473_v4 = vsub.f32 %v36_v35, %v81_v52  ;;  %v2475_v5 = vsub.f32 %v37_v36, %v84_v54  ;;  %v2477_v6 = vpack.c.bf16 %v138_v56, %v135_v55 }
   0xe   :  { %3119 = vst [vmem:[#allocation7_spill] sm:$0xff] %v2456_v60  ;;  %3120 = vst [vmem:[#allocation8_spill] sm:$0xff] %v2471_v3 }
   0xf   :  { %3121 = vst [vmem:[#allocation9_spill] sm:$0xff] %v2477_v6 }
  0x10   :  { %11 = vsyncpa [#allocation3], 0  ;;  %v2485_v9 = vsub.f32 %v54_v41, %v135_v55  ;;  %v2487_v10 = vsub.f32 %v55_v42, %v138_v56  ;;  %v2489_v11 = vpack.c.bf16 %v90_v63, %v87_v57  ;;  %v2491_v12 = vsub.f32 %v38_v43, %v87_v57  ;;  %2014 = vmatpush3.bf16.msra.mxu1 %v2436_v47  ;;  %v60_v29 = vld [vmem:[%s3053_s2 + $0xf0] sm:$0xff]  ;;  %v61_v35 = vld [vmem:[%s3053_s2 + $0xf8] sm:$0xff]  ;;  %s2305_s10 = smov 127   ;;  %s2306_s11 = smov 1  }
  0x11   :  { %v141_v13 = vand.u32 4294901760, %v56_v53  ;;  %v144_v14 = vand.u32 4294901760, %v57_v58  ;;  %v93_v18 = vand.u32 4294901760, %v40_v59  ;;  %v96_v19 = vand.u32 4294901760, %v41_v0  ;;  %2016 = vmatprep.subr.bf16.mxu1 %v2456_v60  ;;  %v44_v36 = vld [vmem:[%s3053_s2 + $0x70] sm:$0xff]  ;;  %v45_v40 = vld [vmem:[%s3053_s2 + $0x78] sm:$0xff] }
  0x12   :  { %3122 = vst [vmem:[#allocation10_spill] sm:$0xff] %v2489_v11  ;;  %v147_v20 = vand.u32 4294901760, %v58_v1  ;;  %v150_v25 = vand.u32 4294901760, %v59_v2  ;;  %v99_v27 = vand.u32 4294901760, %v42_v7  ;;  %v102_v28 = vand.u32 4294901760, %v43_v8  ;;  %v2526_v51 = vld [vmem:[%s3051_s0 + $0x8] sm:$0xff] }
  0x13   :  { %v2498_v31 = vsub.f32 %v39_v48, %v90_v63  ;;  %v2500_v32 = vpack.c.bf16 %v144_v14, %v141_v13  ;;  %v2502_v33 = vsub.f32 %v56_v53, %v141_v13  ;;  %v2504_v34 = vsub.f32 %v57_v58, %v144_v14  ;;  %3126 = vst [vmem:[#allocation14_spill] sm:$0xff] %v2526_v51  ;;  %v2531_v52 = vld [vmem:[%s3051_s0] sm:$0xff]  ;;  %s2308_s2 = smov [#allocation2]  }
  0x14   :  { %v2515_v41 = vpack.c.bf16 %v96_v19, %v93_v18  ;;  %v2517_v42 = vsub.f32 %v40_v59, %v93_v18  ;;  %v2519_v43 = vsub.f32 %v41_v0, %v96_v19  ;;  %v2521_v48 = vpack.c.bf16 %v150_v25, %v147_v20  ;;  %3127 = vst [vmem:[#allocation15_spill] sm:$0xff] %v2531_v52  ;;  %s1762_s17 = sshll.u32 %s2308_s2, 4  ;;  %s1763_s17 = int_to_ptr.vmem [resolvable:$true] %s1762_s17 }
  0x15   :  { %3123 = vst [vmem:[#allocation11_spill] sm:$0xff] %v2500_v32  ;;  %2018 = vmatpush3.bf16.msra.mxu1 %v2471_v3  ;;  %v2534_v53 = vsub.f32 %v58_v1, %v147_v20  ;;  %v2536_v54 = vsub.f32 %v59_v2, %v150_v25  ;;  %v2538_v55 = vpack.c.bf16 %v102_v28, %v99_v27  ;;  %v153_v57 = vand.u32 4294901760, %v60_v29  ;;  %s2280_s18 = scalar_lea.vmem %s1763_s17, 512  ;;  %p2285_p1 = scmp.lt.s32.totalorder %s1763_s17, %s1763_s17 }
  0x16   :  { %3124 = vst [vmem:[#allocation12_spill] sm:$0xff] %v2515_v41  ;;  %3125 = vst [vmem:[#allocation13_spill] sm:$0xff] %v2521_v48  ;;  %v2540_v56 = vsub.f32 %v42_v7, %v99_v27  ;;  %2020 = vmatprep.subr.bf16.mxu1 %v2477_v6  ;;  %v156_v58 = vand.u32 4294901760, %v61_v35  ;;  %v105_v59 = vand.u32 4294901760, %v44_v36  ;;  %v108_v63 = vand.u32 4294901760, %v45_v40  ;;  %p2281_p0 = scmp.ne.s32.totalorder %s1763_s17, %s2280_s18  ;;  %p2286_p2 = scmp.lt.s32.totalorder %s2280_s18, %s2280_s18 }
  0x17   :  { %3128 = vst [vmem:[#allocation16_spill] sm:$0xff] %v2538_v55  ;;  %v2544_v0 = vand.u32 4294901760, %v2526_v51  ;;  %v2547_v13 = vand.u32 4294901760, %v2531_v52  ;;  %v3060_v1 = vand.u32 4294901760, %v2375_v16  ;;  %v3063_v2 = vand.u32 4294901760, %v2377_v17 }
  0x18   :  { %v2551_v14 = vsub.f32 %v43_v8, %v102_v28  ;;  %v2553_v7 = vpack.c.bf16 %v156_v58, %v153_v57  ;;  %v2555_v18 = vsub.f32 %v60_v29, %v153_v57  ;;  %v2557_v19 = vsub.f32 %v61_v35, %v156_v58  ;;  %p2287_p3 = por %p2286_p2, %p2285_p1 }
  0x19   :  { %2022 = vmatpush3.bf16.msra.mxu1 %v2489_v11  ;;  %v2560_v20 = vpack.c.bf16 %v108_v63, %v105_v59  ;;  %v2562_v25 = vsub.f32 %v44_v36, %v105_v59  ;;  %v2566_v27 = vsub.f32 %v2526_v51, %v2544_v0  ;;  %v2570_v8 = vsub.f32 %v2531_v52, %v2547_v13 }
  0x1a   :  { %3129 = vst [vmem:[#allocation17_spill] sm:$0xff] %v2553_v7  ;;  %2024 = vmatprep.subr.bf16.mxu1 %v2500_v32  ;;  %v305_v28 = vsub.f32 %v2375_v16, %v3060_v1  ;;  %v312_v29 = vsub.f32 %v2377_v17, %v3063_v2  ;;  %v3070_v35 = vand.u32 4294901760, %v2390_v22  ;;  %v3071_v36 = vand.u32 4294901760, %v2392_v23  ;;  %p2288_p4 = pnand %p2287_p3, %p2281_p0 }
  0x1b   :  { %3130 = vst [vmem:[#allocation18_spill] sm:$0xff] %v2560_v20  ;;  %3131 = vst [vmem:[#allocation19_spill] sm:$0xff] %v2566_v27  ;;  %v2067_v59 = vpack.c.bf16 %v2377_v17, %v2375_v16  ;;  %v2069_v32 = vpack.c.bf16 %v2392_v23, %v2390_v22  ;;  %558 = vmatprep.mubr.f32.mxu0 %v2566_v27  ;;  %v3132_v58 = vand.u32 4294901760, %v2566_v27  ;;  %v3133_v3 = vand.u32 4294901760, %v2570_v8 }
  0x1c   :  { %v306_v1 = vand.u32 4294901760, %v305_v28  ;;  %v313_v11 = vand.u32 4294901760, %v312_v29  ;;  %v193_v2 = vsub.f32 %v2390_v22, %v3070_v35  ;;  %v200_v57 = vsub.f32 %v2392_v23, %v3071_v36 }
  0x1d   :  { %2026 = vmatpush3.bf16.msra.mxu1 %v2515_v41  ;;  %v161_v6 = vsub.f32 %v2566_v27, %v3132_v58  ;;  %v167_v60 = vsub.f32 %v2570_v8, %v3133_v3  ;;  %2068 = vmatprep.subr.bf16.mxu0 %v2067_v59  ;;  %v3083_v28 = vand.u32 4294901760, %v2400_v26  ;;  %v3080_v29 = vand.u32 4294901760, %v2403_v30 }
  0x1e   :  { %2028 = vmatprep.subr.bf16.mxu1 %v2521_v48  ;;  %v2604_v35 = vsub.f32 %v45_v40, %v108_v63  ;;  %v194_v36 = vand.u32 4294901760, %v193_v2  ;;  %v201_v47 = vand.u32 4294901760, %v200_v57  ;;  %2070 = vmatpush3.bf16.msra.mxu0 %v2069_v32  ;;  %v3079_v41 = vand.u32 4294901760, %v2417_v38 }
  0x1f   :  { %v162_v44 = vand.u32 4294901760, %v161_v6  ;;  %v2035_v58 = vpack.c.bf16 %v313_v11, %v306_v1  ;;  %v319_v3 = vsub.f32 %v2400_v26, %v3083_v28  ;;  %v326_v59 = vsub.f32 %v2403_v30, %v3080_v29 }
  0x20   :  { %v168_v27 = vand.u32 4294901760, %v167_v60  ;;  %v207_v40 = vsub.f32 %v2417_v38, %v3079_v41  ;;  %v3081_v63 = vand.u32 4294901760, %v2419_v39  ;;  %v2071_v32 = vpack.c.bf16 %v2403_v30, %v2400_v26 }
  0x21   :  { %2030 = vmatpush3.bf16.msra.mxu1 %v2538_v55  ;;  %163 = vmatprep.mubr.f32.mxu1 %v162_v44  ;;  %v2037_v6 = vpack.c.bf16 %v201_v47, %v194_v36  ;;  %v320_v11 = vand.u32 4294901760, %v319_v3  ;;  %v2073_v1 = vpack.c.bf16 %v2419_v39, %v2417_v38  ;;  %v3082_v2 = vand.u32 4294901760, %v2432_v45 }
  0x22   :  { %2032 = vmatprep.subr.bf16.mxu1 %v2553_v7  ;;  %v327_v60 = vand.u32 4294901760, %v326_v59  ;;  %v214_v57 = vsub.f32 %v2419_v39, %v3081_v63  ;;  %2072 = vmatprep.subr.bf16.mxu0 %v2071_v32  ;;  %v3084_v41 = vand.u32 4294901760, %v2434_v46  ;;  %v3089_v29 = vand.u32 4294901760, %v2441_v49 }
  0x23   :  { %v208_v44 = vand.u32 4294901760, %v207_v40  ;;  %2074 = vmatpush3.bf16.msra.mxu0 %v2073_v1  ;;  %v333_v47 = vsub.f32 %v2432_v45, %v3082_v2  ;;  %v3092_v36 = vand.u32 4294901760, %v2443_v50  ;;  %v2075_v3 = vpack.c.bf16 %v2434_v46, %v2432_v45 }
  0x24   :  { %v215_v59 = vand.u32 4294901760, %v214_v57  ;;  %v340_v32 = vsub.f32 %v2434_v46, %v3084_v41  ;;  %v221_v63 = vsub.f32 %v2441_v49, %v3089_v29  ;;  %v2077_v40 = vpack.c.bf16 %v2443_v50, %v2441_v49 }
  0x25   :  { %2034 = vmatpush3.bf16.msra.mxu1 %v2560_v20  ;;  %v334_v1 = vand.u32 4294901760, %v333_v47  ;;  %v228_v2 = vsub.f32 %v2443_v50, %v3092_v36  ;;  %2076 = vmatprep.subr.bf16.mxu0 %v2075_v3  ;;  %v3097_v57 = vand.u32 4294901760, %v2458_v61  ;;  %v3096_v28 = vand.u32 4294901760, %v2460_v62 }
  0x26   :  { %2036 = vmatprep.subr.bf16.mxu1 %v2035_v58  ;;  %v2039_v41 = vpack.c.bf16 %v327_v60, %v320_v11  ;;  %v341_v7 = vand.u32 4294901760, %v340_v32  ;;  %v222_v55 = vand.u32 4294901760, %v221_v63  ;;  %v3095_v29 = vand.u32 4294901760, %v2473_v4 }
  0x27   :  { %v229_v48 = vand.u32 4294901760, %v228_v2  ;;  %2078 = vmatpush3.bf16.msra.mxu0 %v2077_v40  ;;  %v347_v47 = vsub.f32 %v2458_v61, %v3097_v57  ;;  %v354_v3 = vsub.f32 %v2460_v62, %v3096_v28  ;;  %v3105_v36 = vand.u32 4294901760, %v2475_v5 }
  0x28   :  { %169 = vmatmul.mubr.f32.vlgmr.msra.gmra.mrb[0].mxu1 %v168_v27  ;;  %v2041_v20 = vpack.c.bf16 %v215_v59, %v208_v44  ;;  %v235_v58 = vsub.f32 %v2473_v4, %v3095_v29  ;;  %v2079_v63 = vpack.c.bf16 %v2460_v62, %v2458_v61  ;;  %v2081_v11 = vpack.c.bf16 %v2475_v5, %v2473_v4 }
  0x29   :  { %2038 = vmatpush3.bf16.msra.mxu1 %v2037_v6  ;;  %v2043_v2 = vpack.c.bf16 %v341_v7, %v334_v1  ;;  %v348_v60 = vand.u32 4294901760, %v347_v47  ;;  %v355_v32 = vand.u32 4294901760, %v354_v3  ;;  %v242_v40 = vsub.f32 %v2475_v5, %v3105_v36 }
  0x2a   :  { %2040 = vmatprep.subr.bf16.mxu1 %v2039_v41  ;;  %v2045_v27 = vpack.c.bf16 %v229_v48, %v222_v55  ;;  %2080 = vmatprep.subr.bf16.mxu0 %v2079_v63  ;;  %v3100_v44 = vand.u32 4294901760, %v2485_v9  ;;  %v3098_v59 = vand.u32 4294901760, %v2487_v10  ;;  %v3099_v29 = vand.u32 4294901760, %v2491_v12 }
  0x2b   :  { %v236_v28 = vand.u32 4294901760, %v235_v58  ;;  %v243_v57 = vand.u32 4294901760, %v242_v40  ;;  %2082 = vmatpush3.bf16.msra.mxu0 %v2081_v11  ;;  %v3104_v7 = vand.u32 4294901760, %v2498_v31  ;;  %v2083_v6 = vpack.c.bf16 %v2487_v10, %v2485_v9 }
  0x2c   :  { %v361_v41 = vsub.f32 %v2485_v9, %v3100_v44  ;;  %v368_v48 = vsub.f32 %v2487_v10, %v3098_v59  ;;  %v249_v55 = vsub.f32 %v2491_v12, %v3099_v29  ;;  %v2085_v1 = vpack.c.bf16 %v2498_v31, %v2491_v12 }
  0x2d   :  { %2042 = vmatpush3.bf16.msra.mxu1 %v2041_v20  ;;  %v2047_v47 = vpack.c.bf16 %v355_v32, %v348_v60  ;;  %v256_v3 = vsub.f32 %v2498_v31, %v3104_v7  ;;  %2084 = vmatprep.subr.bf16.mxu0 %v2083_v6  ;;  %v3103_v58 = vand.u32 4294901760, %v2502_v33  ;;  %v3101_v63 = vand.u32 4294901760, %v2504_v34 }
  0x2e   :  { %2044 = vmatprep.subr.bf16.mxu1 %v2043_v2  ;;  %v362_v11 = vand.u32 4294901760, %v361_v41  ;;  %v369_v40 = vand.u32 4294901760, %v368_v48  ;;  %v250_v59 = vand.u32 4294901760, %v249_v55  ;;  %v3102_v29 = vand.u32 4294901760, %v2517_v42 }
  0x2f   :  { %v257_v44 = vand.u32 4294901760, %v256_v3  ;;  %2086 = vmatpush3.bf16.msra.mxu0 %v2085_v1  ;;  %v375_v20 = vsub.f32 %v2502_v33, %v3103_v58  ;;  %v382_v60 = vsub.f32 %v2504_v34, %v3101_v63  ;;  %v3114_v32 = vand.u32 4294901760, %v2519_v43 }
  0x30   :  { %v2049_v6 = vpack.c.bf16 %v243_v57, %v236_v28  ;;  %v263_v2 = vsub.f32 %v2517_v42, %v3102_v29  ;;  %v2087_v41 = vpack.c.bf16 %v2504_v34, %v2502_v33  ;;  %v2089_v48 = vpack.c.bf16 %v2519_v43, %v2517_v42 }
  0x31   :  { %2046 = vmatpush3.bf16.msra.mxu1 %v2045_v27  ;;  %v2051_v55 = vpack.c.bf16 %v369_v40, %v362_v11  ;;  %v376_v1 = vand.u32 4294901760, %v375_v20  ;;  %v383_v3 = vand.u32 4294901760, %v382_v60  ;;  %v270_v63 = vsub.f32 %v2519_v43, %v3114_v32 }
  0x32   :  { %2048 = vmatprep.subr.bf16.mxu1 %v2047_v47  ;;  %v264_v28 = vand.u32 4294901760, %v263_v2  ;;  %2088 = vmatprep.subr.bf16.mxu0 %v2087_v41  ;;  %v3108_v57 = vand.u32 4294901760, %v2534_v53  ;;  %v3106_v29 = vand.u32 4294901760, %v2536_v54  ;;  %v3107_v58 = vand.u32 4294901760, %v2540_v56 }
  0x33   :  { %v2053_v7 = vpack.c.bf16 %v257_v44, %v250_v59  ;;  %v271_v36 = vand.u32 4294901760, %v270_v63  ;;  %2090 = vmatpush3.bf16.msra.mxu0 %v2089_v48  ;;  %v3109_v27 = vand.u32 4294901760, %v2551_v14  ;;  %v2091_v11 = vpack.c.bf16 %v2536_v54, %v2534_v53 }
  0x34   :  { %v389_v47 = vsub.f32 %v2534_v53, %v3108_v57  ;;  %v396_v40 = vsub.f32 %v2536_v54, %v3106_v29  ;;  %v277_v20 = vsub.f32 %v2540_v56, %v3107_v58  ;;  %v29_v44 = vmul.f32 %v2526_v51, %v2526_v51 }
  0x35   :  { %2050 = vmatpush3.bf16.msra.mxu1 %v2049_v6  ;;  %v2055_v59 = vpack.c.bf16 %v383_v3, %v376_v1  ;;  %v284_v63 = vsub.f32 %v2551_v14, %v3109_v27  ;;  %2092 = vmatprep.subr.bf16.mxu0 %v2091_v11  ;;  %v2093_v60 = vpack.c.bf16 %v2551_v14, %v2540_v56  ;;  %v3111_v2 = vand.u32 4294901760, %v2555_v18 }
  0x36   :  { %2052 = vmatprep.subr.bf16.mxu1 %v2051_v55  ;;  %v2057_v41 = vpack.c.bf16 %v271_v36, %v264_v28  ;;  %v390_v48 = vand.u32 4294901760, %v389_v47  ;;  %v397_v29 = vand.u32 4294901760, %v396_v40  ;;  %v2730_v58 = vand.u32 4294901760, %v29_v44 }
  0x37   :  { %v278_v57 = vand.u32 4294901760, %v277_v20  ;;  %2094 = vmatpush3.bf16.msra.mxu0 %v2093_v60  ;;  %v28_v6 = vmul.f32 %v2531_v52, %v2531_v52  ;;  %v403_v1 = vsub.f32 %v2555_v18, %v3111_v2  ;;  %v3110_v3 = vand.u32 4294901760, %v2557_v19 }
  0x38   :  { %v285_v11 = vand.u32 4294901760, %v284_v63  ;;  %v2739_v27 = vsub.f32 %v29_v44, %v2730_v58  ;;  %v3112_v36 = vand.u32 4294901760, %v2562_v25  ;;  %v3113_v55 = vand.u32 4294901760, %v2604_v35 }
  0x39   :  { %2054 = vmatpush3.bf16.msra.mxu1 %v2053_v7  ;;  %v2059_v28 = vpack.c.bf16 %v397_v29, %v390_v48  ;;  %v2743_v47 = vand.u32 4294901760, %v28_v6  ;;  %v404_v40 = vand.u32 4294901760, %v403_v1  ;;  %v410_v20 = vsub.f32 %v2557_v19, %v3110_v3 }
  0x3a   :  { %2056 = vmatprep.subr.bf16.mxu1 %v2055_v59  ;;  %v175_v60 = vand.u32 4294901760, %v2739_v27  ;;  %v291_v44 = vsub.f32 %v2562_v25, %v3112_v36  ;;  %v298_v63 = vsub.f32 %v2604_v35, %v3113_v55  ;;  %v2095_v29 = vpack.c.bf16 %v2557_v19, %v2555_v18 }
  0x3b   :  { %v2758_v7 = vsub.f32 %v28_v6, %v2743_v47  ;;  %v411_v48 = vand.u32 4294901760, %v410_v20  ;;  %v2097_v59 = vpack.c.bf16 %v2604_v35, %v2562_v25  ;;  %v3134_v1 = vand.u32 4294901760, %v2375_v16 }
  0x3c   :  { %v3135_v3 = vand.u32 4294901760, %v2377_v17  ;;  %v2061_v36 = vpack.c.bf16 %v285_v11, %v278_v57  ;;  %v176_v55 = vsub.f32 %v2739_v27, %v175_v60  ;;  %2096 = vmatprep.subr.bf16.mxu0 %v2095_v29  ;;  %v292_v6 = vand.u32 4294901760, %v291_v44  ;;  %v3152_v29 = vld [vmem:[#allocation19_spill] sm:$0xff] }
  0x3d   :  { %2058 = vmatpush3.bf16.msra.mxu1 %v2057_v41  ;;  %v181_v32 = vand.u32 4294901760, %v2758_v7  ;;  %v299_v51 = vand.u32 4294901760, %v298_v63  ;;  %2098 = vmatpush3.bf16.msra.mxu0 %v2097_v59  ;;  %v3136_v20 = vand.u32 4294901760, %v2390_v22  ;;  %v3137_v52 = vand.u32 4294901760, %v2392_v23  ;;  %v3154_v59 = vld [vmem:[#allocation5_spill] sm:$0xff] }
  0x3e   :  { %v2131_v2 = vpack.c.bf16 %v3135_v3, %v3134_v1  ;;  %2060 = vmatprep.subr.bf16.mxu1 %v2059_v28  ;;  %v177_v17 = vand.u32 4294901760, %v176_v55  ;;  %v2063_v3 = vpack.c.bf16 %v411_v48, %v404_v40  ;;  %v3138_v41 = vand.u32 4294901760, %v2400_v26 }
  0x3f   :  { %v2133_v16 = vpack.c.bf16 %v3137_v52, %v3136_v20  ;;  %v182_v57 = vsub.f32 %v2758_v7, %v181_v32  ;;  %v3139_v11 = vand.u32 4294901760, %v2403_v30  ;;  %v2065_v23 = vpack.c.bf16 %v299_v51, %v292_v6  ;;  %v3159_v20 = vld [vmem:[#allocation6_spill] sm:$0xff] }
  0x40   :  { %2132 = vmatprep.subr.bf16.mxu0 %v2131_v2  ;;  %178 = vmatprep.mubr.f32.mxu1 %v177_v17  ;;  %v3140_v52 = vand.u32 4294901760, %v2417_v38  ;;  %v3141_v2 = vand.u32 4294901760, %v2419_v39  ;;  %v3142_v26 = vand.u32 4294901760, %v2432_v45  ;;  %v3143_v30 = vand.u32 4294901760, %v2434_v46 }
  0x41   :  { %v2135_v44 = vpack.c.bf16 %v3139_v11, %v3138_v41  ;;  %561 = vmatmul.mubr.f32.vlgmr.msra.gmra.mrb[0].mxu0 %v2570_v8  ;;  %2062 = vmatpush3.bf16.msra.mxu1 %v2061_v36  ;;  %v183_v22 = vand.u32 4294901760, %v182_v57  ;;  %v3144_v38 = vand.u32 4294901760, %v2441_v49  ;;  %v3145_v39 = vand.u32 4294901760, %v2443_v50 }
  0x42   :  { %2134 = vmatpush3.bf16.msra.mxu0 %v2133_v16  ;;  %v2137_v55 = vpack.c.bf16 %v3141_v2, %v3140_v52  ;;  %2064 = vmatprep.subr.bf16.mxu1 %v2063_v3  ;;  %v2139_v28 = vpack.c.bf16 %v3143_v30, %v3142_v26  ;;  %v3146_v45 = vand.u32 4294901760, %v2458_v61  ;;  %v3147_v46 = vand.u32 4294901760, %v2460_v62  ;;  %v3160_v16 = vld [vmem:[#allocation7_spill] sm:$0xff]  ;;  %v3179_v26 = vld [vmem:[#allocation18_spill] sm:$0xff] }
  0x43   :  { %567 = vmatprep.mubr.f32.mxu0 %v2739_v27  ;;  %184 = vmatmul.mubr.f32.gmra.mrb[2].mxu1 %v183_v22  ;;  %v2141_v51 = vpack.c.bf16 %v3145_v39, %v3144_v38  ;;  %v3148_v49 = vand.u32 4294901760, %v2473_v4  ;;  %v3149_v50 = vand.u32 4294901760, %v2475_v5  ;;  %v3150_v61 = vand.u32 4294901760, %v2485_v9  ;;  %v985_v30 = vld [vmem:[%s3054_s3 + $0x28] sm:$0xff] }
  0x44   :  { %2136 = vmatprep.subr.bf16.mxu0 %v2135_v44  ;;  %414 = vmatprep.mubr.f32.mxu1 %v2544_v0  ;;  %v2143_v36 = vpack.c.bf16 %v3147_v46, %v3146_v45  ;;  %v3151_v62 = vand.u32 4294901760, %v2487_v10  ;;  %v3153_v48 = vand.u32 4294901760, %v3152_v29  ;;  %v3155_v4 = vand.u32 4294901760, %v2491_v12  ;;  %v986_v45 = vld [vmem:[%s3054_s3 + $0x30] sm:$0xff] }
  0x45   :  { %570 = vmatmul.mubr.f32.gmra.mrb[2].mxu0 %v2758_v7  ;;  %2066 = vmatpush3.bf16.msra.mxu1 %v2065_v23  ;;  %v2145_v40 = vpack.c.bf16 %v3149_v50, %v3148_v49  ;;  %v3156_v5 = vand.u32 4294901760, %v2498_v31  ;;  %v3157_v9 = vand.u32 4294901760, %v2502_v33  ;;  %v3158_v10 = vand.u32 4294901760, %v2504_v34  ;;  %v3165_v33 = vld [vmem:[#allocation8_spill] sm:$0xff]  ;;  %v3166_v34 = vld [vmem:[#allocation9_spill] sm:$0xff] }
  0x46   :  { %2138 = vmatpush3.bf16.msra.mxu0 %v2137_v55  ;;  %2100 = vmatprep.subr.bf16.mxu1 %v2373_v15  ;;  %v2147_v63 = vpack.c.bf16 %v3151_v62, %v3150_v61  ;;  %v3161_v17 = vand.u32 4294901760, %v2517_v42  ;;  %v3162_v3 = vand.u32 4294901760, %v2519_v43  ;;  %v3163_v12 = vand.u32 4294901760, %v2534_v53  ;;  %v3171_v53 = vld [vmem:[#allocation10_spill] sm:$0xff] }
  0x47   :  { %2140 = vmatprep.subr.bf16.mxu0 %v2139_v28  ;;  %855 = vmatprep.mubr.f32.mxu0 %v2544_v0  ;;  %v2149_v1 = vpack.c.bf16 %v3156_v5, %v3155_v4  ;;  %v2151_v6 = vpack.c.bf16 %v3158_v10, %v3157_v9  ;;  %v3164_v31 = vand.u32 4294901760, %v2536_v54  ;;  %v3167_v11 = vand.u32 4294901760, %v2540_v56  ;;  %v3172_v54 = vld [vmem:[#allocation11_spill] sm:$0xff]  ;;  %v3175_v56 = vld [vmem:[#allocation12_spill] sm:$0xff] }
  0x48   :  { %416 = vmatmul.mubr.f32.vlgmr.msra.gmra.mrb[4].mxu1 %v2547_v13  ;;  %v2153_v57 = vpack.c.bf16 %v3162_v3, %v3161_v17  ;;  %v3168_v44 = vand.u32 4294901760, %v2551_v14  ;;  %v3169_v42 = vand.u32 4294901760, %v2555_v18  ;;  %v3170_v43 = vand.u32 4294901760, %v2557_v19  ;;  %v3176_v14 = vld [vmem:[#allocation13_spill] sm:$0xff]  ;;  %v3177_v18 = vld [vmem:[#allocation16_spill] sm:$0xff] }
  0x49   :  { %2102 = vmatpush3.bf16.msra.mxu1 %v2388_v21  ;;  %421 = vmatprep.mubr.f32.mxu1 %v2730_v58  ;;  %v2155_v41 = vpack.c.bf16 %v3164_v31, %v3163_v12  ;;  %v3173_v52 = vand.u32 4294901760, %v2562_v25  ;;  %v3174_v2 = vand.u32 4294901760, %v2604_v35  ;;  %v3178_v19 = vld [vmem:[#allocation17_spill] sm:$0xff]  ;;  %v3180_v25 = vand.u32 4294901760, %v2570_v8  ;;  %v987_v28 = vld [vmem:[%s3054_s3 + $0x38] sm:$0xff] }
  0x4a   :  { %2104 = vmatprep.subr.bf16.mxu1 %v2394_v24  ;;  %2142 = vmatpush3.bf16.msra.mxu0 %v2141_v51  ;;  %v2157_v22 = vpack.c.bf16 %v3168_v44, %v3167_v11  ;;  %v2159_v23 = vpack.c.bf16 %v3170_v43, %v3169_v42  ;;  %v1003_v38 = vand.u32 4294901760, %v985_v30  ;;  %v1007_v39 = vand.u32 4294901760, %v987_v28  ;;  %v984_v51 = vld [vmem:[%s3054_s3 + $0x20] sm:$0xff] }
  0x4b   :  { %2144 = vmatprep.subr.bf16.mxu0 %v2143_v36  ;;  %v2161_v55 = vpack.c.bf16 %v3174_v2, %v3173_v52  ;;  %v1005_v49 = vand.u32 4294901760, %v984_v51  ;;  %v1009_v50 = vand.u32 4294901760, %v986_v45  ;;  %vm988_vm0 = vcmask 261120  }
  0x4c   :  { %423 = vmatmul.mubr.f32.gmra.mrb[6].mxu1 %v2743_v47  ;;  %v2930_v62 = vpack.c.bf16 %v1007_v39, %v1003_v38  ;;  %v2934_v29 = vsub.f32 %v987_v28, %v1007_v39  ;;  %vm1669_vm3 = vcmask 195584  }
  0x4d   :  { %2106 = vmatpush3.bf16.msra.mxu1 %v2415_v37  ;;  %674 = vmatprep.mubr.f32.mxu1 %v3153_v48  ;;  %v2939_v4 = vsub.f32 %v984_v51, %v1005_v49  ;;  %v2941_v5 = vsub.f32 %v986_v45, %v1009_v50 }
  0x4e   :  { %2108 = vmatprep.subr.bf16.mxu1 %v3154_v59  ;;  %2146 = vmatpush3.bf16.msra.mxu0 %v2145_v40  ;;  %v1128_v17 = vand.u32 4294901760, %v2934_v29 }
  0x4f   :  { %2148 = vmatprep.subr.bf16.mxu0 %v2147_v63  ;;  %v2932_v63 = vsub.f32 %v985_v30, %v1003_v38  ;;  %v1122_v3 = vand.u32 4294901760, %v2939_v4 }
  0x50   :  { %v1129_v11 = vsub.f32 %v2934_v29, %v1128_v17 }
  0x51   :  { %2110 = vmatpush3.bf16.msra.mxu1 %v3159_v20  ;;  %v1123_v44 = vsub.f32 %v2939_v4, %v1122_v3 }
  0x52   :  { %2112 = vmatprep.subr.bf16.mxu1 %v3160_v16  ;;  %2150 = vmatpush3.bf16.msra.mxu0 %v2149_v1 }
  0x53   :  { %2152 = vmatprep.subr.bf16.mxu0 %v2151_v6 }
  0x55   :  { %2114 = vmatpush3.bf16.msra.mxu1 %v3165_v33 }
  0x56   :  { %2116 = vmatprep.subr.bf16.mxu1 %v3166_v34  ;;  %2154 = vmatpush3.bf16.msra.mxu0 %v2153_v57  ;;  %v1134_v57 = vand.u32 4294901760, %v2941_v5 }
  0x57   :  { %2156 = vmatprep.subr.bf16.mxu0 %v2155_v41 }
  0x59   :  { %2118 = vmatpush3.bf16.msra.mxu1 %v3171_v53 }
  0x5a   :  { %2120 = vmatprep.subr.bf16.mxu1 %v3172_v54  ;;  %2158 = vmatpush3.bf16.msra.mxu0 %v2157_v22  ;;  %v1135_v22 = vsub.f32 %v2941_v5, %v1134_v57 }
  0x5b   :  { %2160 = vmatprep.subr.bf16.mxu0 %v2159_v23  ;;  %v1130_v23 = vand.u32 4294901760, %v1129_v11 }
  0x5d   :  { %2122 = vmatpush3.bf16.msra.mxu1 %v3175_v56 }
  0x5e   :  { %2124 = vmatprep.subr.bf16.mxu1 %v3176_v14  ;;  %2162 = vmatpush3.bf16.msra.mxu0 %v2161_v55 }
  0x61   :  { %2126 = vmatpush3.bf16.msra.mxu1 %v3177_v18  ;;  %857 = vmatmul.mubr.f32.vlgmr.msra.gmra.mrb[4].mxu0 %v2547_v13 }
  0x62   :  { %2128 = vmatprep.subr.bf16.mxu1 %v3178_v19  ;;  %862 = vmatprep.mubr.f32.mxu0 %v2730_v58 }
  0x65   :  { %2130 = vmatpush3.bf16.msra.mxu1 %v3179_v26  ;;  %864 = vmatmul.mubr.f32.gmra.mrb[6].mxu0 %v2743_v47 }
  0x66   :  { %2164 = vmatprep.subr.bf16.mxu1 %v2373_v15  ;;  %v981_v15 = vld [vmem:[%s3054_s3 + $0x8] sm:$0xff] }
  0x68   :  { %678 = vmatmul.mubr.f32.vlgmr.msra.gmra.mrb[8].mxu1 %v3180_v25 }
  0x69   :  { %2166 = vmatpush3.bf16.msra.mxu1 %v2388_v21  ;;  %685 = vmatprep.mubr.f32.mxu1 %v175_v60  ;;  %v983_v21 = vld [vmem:[%s3054_s3 + $0x18] sm:$0xff] }
  0x6a   :  { %2168 = vmatprep.subr.bf16.mxu1 %v2394_v24  ;;  %v995_v24 = vand.u32 4294901760, %v981_v15 }
  0x6c   :  { %689 = vmatmul.mubr.f32.gmra.mrb[10].mxu1 %v181_v32  ;;  %v2902_v32 = vsub.f32 %v981_v15, %v995_v24 }
  0x6d   :  { %2170 = vmatpush3.bf16.msra.mxu1 %v2415_v37  ;;  %966 = vmatprep.mubr.f32.mxu1 %v2544_v0  ;;  %v999_v37 = vand.u32 4294901760, %v983_v21  ;;  %v980_v0 = vld [vmem:[%s3054_s3] sm:$0xff] }
  0x6e   :  { %2172 = vmatprep.subr.bf16.mxu1 %v3154_v59  ;;  %v997_v8 = vand.u32 4294901760, %v980_v0  ;;  %v1092_v46 = vand.u32 4294901760, %v2902_v32  ;;  %v2937_v59 = vpack.c.bf16 %v1009_v50, %v1005_v49 }
  0x6f   :  { %v2904_v27 = vsub.f32 %v983_v21, %v999_v37 }
  0x70   :  { %v2908_v60 = vsub.f32 %v980_v0, %v997_v8  ;;  %v1093_v48 = vsub.f32 %v2902_v32, %v1092_v46 }
  0x71   :  { %2174 = vmatpush3.bf16.msra.mxu1 %v3159_v20  ;;  %v1104_v36 = vand.u32 4294901760, %v2904_v27  ;;  %v1116_v20 = vand.u32 4294901760, %v2932_v63  ;;  %v2211_v55 = vpack.c.bf16 %v2904_v27, %v2902_v32 }
  0x72   :  { %2176 = vmatprep.subr.bf16.mxu1 %v3160_v16  ;;  %v1098_v40 = vand.u32 4294901760, %v2908_v60  ;;  %v1094_v9 = vand.u32 4294901760, %v1093_v48 }
  0x73   :  { %v1105_v1 = vsub.f32 %v2904_v27, %v1104_v36  ;;  %v1117_v41 = vsub.f32 %v2932_v63, %v1116_v20  ;;  %v2971_v15 = vpack.c.bf16 %v1104_v36, %v1092_v46 }
  0x74   :  { %v1099_v10 = vsub.f32 %v2908_v60, %v1098_v40 }
  0x75   :  { %2178 = vmatpush3.bf16.msra.mxu1 %v3165_v33  ;;  %v1106_v16 = vand.u32 4294901760, %v1105_v1  ;;  %v2304_v33 = vmov 0.0   ;;  %v1118_v43 = vand.u32 4294901760, %v1117_v41 }
  0x76   :  { %2180 = vmatprep.subr.bf16.mxu1 %v3166_v34  ;;  %v1100_v12 = vand.u32 4294901760, %v1099_v10  ;;  %1067 = vmatprep.mubr.f32.mxu0 %v2304_v33 }
  0x77   :  { %v2203_v34 = vpack.c.bf16 %v1106_v16, %v1094_v9  ;;  %v2959_v52 = vpack.c.bf16 %v1130_v23, %v1118_v43 }
  0x79   :  { %2182 = vmatpush3.bf16.msra.mxu1 %v3171_v53  ;;  %v1124_v53 = vand.u32 4294901760, %v1123_v44 }
  0x7a   :  { %2184 = vmatprep.subr.bf16.mxu1 %v3172_v54  ;;  %v1136_v54 = vand.u32 4294901760, %v1135_v22 }
  0x7c   :  { %v2961_v2 = vpack.c.bf16 %v1136_v54, %v1124_v53 }
  0x7d   :  { %2186 = vmatpush3.bf16.msra.mxu1 %v3175_v56 }
  0x7e   :  { %2188 = vmatprep.subr.bf16.mxu1 %v3176_v14  ;;  %v2215_v14 = vpack.c.bf16 %v2934_v29, %v2932_v63 }
  0x81   :  { %2190 = vmatpush3.bf16.msra.mxu1 %v3177_v18  ;;  %v2217_v18 = vpack.c.bf16 %v2941_v5, %v2939_v4 }
  0x82   :  { %2192 = vmatprep.subr.bf16.mxu1 %v3178_v19 }
  0x85   :  { %2194 = vmatpush3.bf16.msra.mxu1 %v3179_v26 }
  0x88   :  { %968 = vmatmul.mubr.f32.vlgmr.msra.gmra.mrb[12].mxu1 %v2547_v13  ;;  %v982_v13 = vld [vmem:[%s3054_s3 + $0x10] sm:$0xff] }
  0x89   :  { %973 = vmatprep.mubr.f32.mxu1 %v2730_v58  ;;  %v1001_v35 = vand.u32 4294901760, %v982_v13  ;;  %v2900_v58 = vpack.c.bf16 %v999_v37, %v995_v24  ;;  %v2975_v24 = vpack.c.bf16 %v1128_v17, %v1116_v20  ;;  %v2977_v37 = vpack.c.bf16 %v1134_v57, %v1122_v3 }
  0x8b   :  { %v2910_v7 = vsub.f32 %v982_v13, %v1001_v35  ;;  %2196 = vmatprep.subr.bf16.mxu0 %v2900_v58 }
  0x8c   :  { %975 = vmatmul.mubr.f32.gmra.mrb[14].mxu1 %v2743_v47  ;;  %v2906_v47 = vpack.c.bf16 %v1001_v35, %v997_v8 }
  0x8d   :  { %v1110_v61 = vand.u32 4294901760, %v2910_v7  ;;  %v2213_v56 = vpack.c.bf16 %v2910_v7, %v2908_v60 }
  0x8e   :  { %2198 = vmatpush1.bf16.msra.mxu0 %v2906_v47 }
  0x8f   :  { %2200 = vmatprep.subr.bf16.mxu0 %v2930_v62  ;;  %v1111_v6 = vsub.f32 %v2910_v7, %v1110_v61  ;;  %v2973_v21 = vpack.c.bf16 %v1110_v61, %v1098_v40 }
  0x91   :  { %v1112_v31 = vand.u32 4294901760, %v1111_v6 }
  0x92   :  { %2202 = vmatpush1.bf16.msra.mxu0 %v2937_v59 }
  0x93   :  { %v2957_v42 = vpack.c.bf16 %v1112_v31, %v1100_v12  ;;  %2204 = vmatprep.subr.bf16.mxu0 %v2203_v34 }
  0xfb   :  { %v1807_v19 = vpop.f32.mrb[0].mxu1 }
  0xfc   :  { %v1808_v26 = vpop.f32.mrb[1].mxu1 }
  0xfd   :  { %v1809_v25 = vadd.f32 %v1808_v26, %v1807_v19 }
 0x114   :  { %v1883_v0 = vpop.f32.mrb[0].mxu0 }
 0x115   :  { %v1884_v13 = vpop.f32.mrb[1].mxu0 }
 0x116   :  { %v1885_v8 = vadd.f32 %v1884_v13, %v1883_v0  ;;  %v1810_v35 = vpop.f32.mrb[2].mxu1 }
 0x117   :  { %v1811_v30 = vpop.f32.mrb[3].mxu1 }
 0x118   :  { %v1886_v28 = vpop.f32.mrb[2].mxu0  ;;  %v1812_v38 = vadd.f32 %v1811_v30, %v1810_v35 }
 0x119   :  { %v1887_v39 = vpop.f32.mrb[3].mxu0 }
 0x11a   :  { %v1888_v51 = vadd.f32 %v1887_v39, %v1886_v28 }
 0x11b   :  { %v1845_v45 = vpop.f32.mrb[4].mxu1 }
 0x11c   :  { %v1846_v49 = vpop.f32.mrb[5].mxu1 }
 0x11d   :  { %v1847_v50 = vadd.f32 %v1846_v49, %v1845_v45 }
 0x11f   :  { %v418_v46 = vadd.f32 %v1847_v50, %v1809_v25  ;;  %v1848_v36 = vpop.f32.mrb[6].mxu1 }
 0x120   :  { %v1849_v40 = vpop.f32.mrb[7].mxu1 }
 0x121   :  { %v563_v61 = vadd.f32 %v1885_v8, %v418_v46  ;;  %v1850_v48 = vadd.f32 %v1849_v40, %v1848_v36 }
 0x123   :  { %v425_v1 = vadd.f32 %v1850_v48, %v1812_v38 }
 0x125   :  { %v572_v9 = vadd.f32 %v1888_v51, %v425_v1 }
 0x134   :  { %v1959_v10 = vpop.f32.mrb[4].mxu0 }
 0x135   :  { %v1960_v6 = vpop.f32.mrb[5].mxu0 }
 0x136   :  { %v1961_v20 = vadd.f32 %v1960_v6, %v1959_v10 }
 0x138   :  { %v1962_v16 = vpop.f32.mrb[6].mxu0 }
 0x139   :  { %v1963_v17 = vpop.f32.mrb[7].mxu0 }
 0x13a   :  { %v1964_v3 = vadd.f32 %v1963_v17, %v1962_v16 }
 0x13b   :  { %v1921_v57 = vpop.f32.mrb[8].mxu1 }
 0x13c   :  { %v1922_v12 = vpop.f32.mrb[9].mxu1 }
 0x13d   :  { %v1923_v31 = vadd.f32 %v1922_v12, %v1921_v57  ;;  %v1658_v57 = vld [vmem:[%s3056_s5 + $0x8] sm:$0xff]  ;;  %v2307_v12 = vmov 0  }
 0x13e   :  { %2274 = vset.pattern.permute.xlu0 %v2307_v12  ;;  %2275 = vset.pattern.permute.xlu1 %v2307_v12 }
 0x13f   :  { %v680_v41 = vadd.f32 %v1923_v31, %v563_v61  ;;  %v1924_v34 = vpop.f32.mrb[10].mxu1 }
 0x140   :  { %v1925_v11 = vpop.f32.mrb[11].mxu1 }
 0x141   :  { %v859_v44 = vadd.f32 %v1961_v20, %v680_v41  ;;  %v1926_v22 = vadd.f32 %v1925_v11, %v1924_v34 }
 0x143   :  { %v691_v43 = vadd.f32 %v1926_v22, %v572_v9 }
 0x145   :  { %v866_v23 = vadd.f32 %v1964_v3, %v691_v43  ;;  %v1657_v3 = vld [vmem:[%s3056_s5] sm:$0xff] }
 0x15b   :  { %v1997_v53 = vpop.f32.mrb[12].mxu1 }
 0x15c   :  { %v1998_v54 = vpop.f32.mrb[13].mxu1 }
 0x15d   :  { %v1999_v19 = vadd.f32 %v1998_v54, %v1997_v53 }
 0x15f   :  { %v970_v26 = vadd.f32 %v1999_v19, %v859_v44  ;;  %v2000_v25 = vpop.f32.mrb[14].mxu1 }
 0x160   :  { %v2001_v0 = vpop.f32.mrb[15].mxu1 }
 0x161   :  { %v990_v13 = vsel %vm988_vm0, %v970_v26, 0  ;;  %v2002_v8 = vadd.f32 %v2001_v0, %v2000_v25 }
 0x162   :  { %v1068_v35 = vand.u32 4294901760, %v990_v13 }
 0x163   :  { %v977_v30 = vadd.f32 %v2002_v8, %v866_v23 }
 0x164   :  { %v1069_v28 = vsub.f32 %v990_v13, %v1068_v35 }
 0x165   :  { %v993_v38 = vsel %vm988_vm0, %v977_v30, 0 }
 0x166   :  { %v1070_v39 = vand.u32 4294901760, %v1069_v28  ;;  %v1079_v51 = vand.u32 4294901760, %v993_v38 }
 0x168   :  { %v1071_v45 = vsub.f32 %v1069_v28, %v1070_v39  ;;  %v1080_v49 = vsub.f32 %v993_v38, %v1079_v51 }
 0x16a   :  { %v1072_v50 = vand.u32 4294901760, %v1071_v45  ;;  %v1081_v46 = vand.u32 4294901760, %v1080_v49  ;;  %v1656_v45 = vld [vmem:[%s3055_s4 + $0x8] sm:$0xff] }
 0x16c   :  { %1073 = vmatmul.mubr.f32.vlgmr.msra.gmra.mrb[8].mxu0 %v1072_v50  ;;  %v1082_v36 = vsub.f32 %v1080_v49, %v1081_v46 }
 0x16d   :  { %2206 = vmatpush1.bf16.msra.mxu0 %v2957_v42  ;;  %1078 = vmatprep.mubr.f32.mxu0 %v2304_v33 }
 0x16e   :  { %v1083_v40 = vand.u32 4294901760, %v1082_v36  ;;  %2208 = vmatprep.subr.bf16.mxu0 %v2959_v52  ;;  %v26_v52 = vld [vmem:[%s3052_s1] sm:$0xff] }
 0x170   :  { %1084 = vmatmul.mubr.f32.gmra.mrb[10].mxu0 %v1083_v40 }
 0x171   :  { %2210 = vmatpush1.bf16.msra.mxu0 %v2961_v2  ;;  %1194 = vmatprep.mubr.f32.mxu0 %v2304_v33 }
 0x172   :  { %2212 = vmatprep.subr.bf16.mxu0 %v2211_v55  ;;  %v27_v55 = vld [vmem:[%s3052_s1 + $0x8] sm:$0xff] }
 0x174   :  { %1196 = vmatmul.mubr.f32.vlgmr.msra.gmra.mrb[8].mxu0 %v1068_v35 }
 0x175   :  { %2214 = vmatpush1.bf16.msra.mxu0 %v2213_v56  ;;  %1201 = vmatprep.mubr.f32.mxu0 %v2304_v33  ;;  %v3181_v56 = vld [vmem:[#allocation15_spill] sm:$0xff] }
 0x176   :  { %2216 = vmatprep.subr.bf16.mxu0 %v2215_v14 }
 0x178   :  { %1203 = vmatmul.mubr.f32.gmra.mrb[10].mxu0 %v1079_v51 }
 0x179   :  { %2218 = vmatpush1.bf16.msra.mxu0 %v2217_v18  ;;  %1289 = vmatprep.mubr.f32.mxu0 %v2304_v33 }
 0x17a   :  { %2220 = vmatprep.subr.bf16.mxu0 %v2900_v58 }
 0x17c   :  { %1292 = vmatmul.mubr.f32.vlgmr.msra.gmra.mrb[8].mxu0 %v1069_v28 }
 0x17d   :  { %2222 = vmatpush1.bf16.msra.mxu0 %v2906_v47  ;;  %1297 = vmatprep.mubr.f32.mxu0 %v2304_v33 }
 0x17e   :  { %2224 = vmatprep.subr.bf16.mxu0 %v2930_v62 }
 0x180   :  { %1300 = vmatmul.mubr.f32.gmra.mrb[10].mxu0 %v1080_v49 }
 0x181   :  { %2226 = vmatpush1.bf16.msra.mxu0 %v2937_v59  ;;  %1378 = vmatprep.mubr.f32.mxu0 %v2304_v33 }
 0x182   :  { %2228 = vmatprep.subr.bf16.mxu0 %v2971_v15 }
 0x184   :  { %1382 = vmatmul.mubr.f32.vlgmr.msra.gmra.mrb[8].mxu0 %v1070_v39 }
 0x185   :  { %2230 = vmatpush1.bf16.msra.mxu0 %v2973_v21  ;;  %1387 = vmatprep.mubr.f32.mxu0 %v2304_v33  ;;  %v3182_v21 = vld [vmem:[#allocation14_spill] sm:$0xff] }
 0x186   :  { %2232 = vmatprep.subr.bf16.mxu0 %v2975_v24 }
 0x188   :  { %1391 = vmatmul.mubr.f32.gmra.mrb[10].mxu0 %v1081_v46 }
 0x189   :  { %2234 = vmatpush1.bf16.msra.mxu0 %v2977_v37  ;;  %1485 = vmatprep.mubr.f32.mxu0 %v2304_v33 }
 0x18a   :  { %2236 = vmatprep.subr.bf16.mxu0 %v2900_v58 }
 0x18c   :  { %1487 = vmatmul.mubr.f32.vlgmr.msra.gmra.mrb[8].mxu0 %v1068_v35 }
 0x18d   :  { %2238 = vmatpush1.bf16.msra.mxu0 %v2906_v47  ;;  %1492 = vmatprep.mubr.f32.mxu0 %v2304_v33 }
 0x18e   :  { %2240 = vmatprep.subr.bf16.mxu0 %v2930_v62  ;;  %v1599_v62 = vlaneseq }
 0x190   :  { %1494 = vmatmul.mubr.f32.gmra.mrb[10].mxu0 %v1079_v51  ;;  %v1624_v31 = vand.u32 127, %v1599_v62 }
 0x191   :  { %2242 = vmatpush1.bf16.msra.mxu0 %v2937_v59  ;;  %1572 = vmatprep.mubr.f32.mxu0 %v2304_v33  ;;  %v1600_v59 = vshrl.u32 %v1599_v62, 7 }
 0x192   :  { %vm1625_vm1 = vcmp.lt.s32.totalorder %v1624_v31, 1  ;;  %vm1642_vm2 = vcmp.lt.s32.totalorder %v1624_v31, 127 }
 0x193   :  { %v1601_v42 = vsub.s32 0, %v1600_v59  ;;  %v1611_v2 = vsub.s32 1, %v1600_v59  ;;  %v1630_v41 = vsub.s32 2, %v1600_v59  ;;  %v1647_v44 = vsub.s32 4, %v1600_v59 }
 0x194   :  { %1574 = vmatmul.mubr.f32.vlgmr.msra.gmra.mrb[8].mxu0 %v1068_v35 }
 0x195   :  { %1579 = vmatprep.mubr.f32.mxu0 %v2304_v33  ;;  %v1602_v18 = vrot.slane %v26_v52, %v1601_v42  ;;  %v1612_v48 = vrot.slane %v26_v52, %v1611_v2  ;;  %v1606_v1 = vrot.slane %v27_v55, %v1601_v42  ;;  %v1616_v16 = vrot.slane %v27_v55, %v1611_v2 }
 0x196   :  { %v1631_v22 = vrot.slane %v26_v52, %v1630_v41  ;;  %v1635_v43 = vrot.slane %v27_v55, %v1630_v41  ;;  %v1652_v26 = vrot.slane %v27_v55, %v1647_v44  ;;  %v1648_v30 = vrot.slane %v26_v52, %v1647_v44 }
 0x198   :  { %1581 = vmatmul.mubr.f32.gmra.mrb[10].mxu0 %v1079_v51  ;;  %v1655_v51 = vld [vmem:[%s3055_s4] sm:$0xff] }
 0x199   :  { %1740 = vmatprep.mubr.f32.mxu0 %v2304_v33 }
 0x267   :  { %v1575_v32 = vpop.f32.mrb[8].mxu0 }
 0x268   :  { %v1577_v58 = vpop.f32.mrb[9].mxu0  ;;  %v1587_v27 = vmul.f32 %v1575_v32, %v1575_v32  ;;  %v1591_v14 = vsub.f32 %v3181_v56, %v1575_v32 }
 0x269   :  { %v1588_v60 = vmul.f32 %v1577_v58, %v1577_v58  ;;  %v1592_v24 = vsub.f32 %v3182_v21, %v1577_v58 }
 0x26b   :  { %v1582_v47 = vpop.f32.mrb[10].mxu0 }
 0x26c   :  { %v1589_v7 = vsub.f32 %v1582_v47, %v1587_v27  ;;  %v1584_v63 = vpop.f32.mrb[11].mxu0 }
 0x26d   :  { %v1590_v29 = vsub.f32 %v1584_v63, %v1588_v60 }
 0x26e   :  { %v1593_v4 = vadd.f32 1e-05, %v1589_v7 }
 0x26f   :  { %v1594_v5 = vadd.f32 1e-05, %v1590_v29 }
 0x270   :  { %2276 = vrsqrt.f32 %v1593_v4 }
 0x271   :  { %2278 = vrsqrt.f32 %v1594_v5 }
 0x27a   :  { %v2277_v15 = vpop.eup %2276 }
 0x27b   :  { %v2279_v37 = vpop.eup %2278  ;;  %v1597_v61 = vmul.f32 %v2277_v15, %v1591_v14 }
 0x27c   :  { %v1598_v9 = vmul.f32 %v2279_v37, %v1592_v24 }
 0x27d   :  { %v1607_v10 = vmul.f32 %v1602_v18, %v1597_v61 }
 0x27e   :  { %v1608_v20 = vmul.f32 %v1606_v1, %v1598_v9 }
 0x27f   :  { %v1617_v6 = vadd.f32 %v1612_v48, %v1607_v10 }
 0x280   :  { %v1618_v17 = vadd.f32 %v1616_v16, %v1608_v20 }
 0x281   :  { %1638 = vrot.lane.b32.xlu1 %v1617_v6, %s2305_s10  ;;  %1619 = vrot.lane.b32.xlu0 %v1617_v6, %s2306_s11 }
 0x285   :  { %1640 = vrot.lane.b32.xlu1 %v1618_v17, %s2305_s10  ;;  %1621 = vrot.lane.b32.xlu0 %v1618_v17, %s2306_s11 }
 0x289   :  { %1661 = vperm.xlu0 %2274, %v1657_v3   ;;  %1666 = vperm.xlu1 %2275, %v1658_v57  }
 0x2f3   :  { %v1639_v34 = vpop.permute.xlu1 %1638  ;;  %v1620_v11 = vpop.permute.xlu0 %1619 }
 0x2f7   :  { %v1641_v23 = vpop.permute.xlu1 %1640  ;;  %v1622_v53 = vpop.permute.xlu0 %1621 }
 0x2f8   :  { %v1626_v54 = vsel %vm1625_vm1, %v1620_v11, %v1622_v53  ;;  %v1627_v19 = vsel %vm1625_vm1, %v1622_v53, %v1620_v11  ;;  %v1644_v13 = vsel %vm1642_vm2, %v1641_v23, %v1639_v34  ;;  %v1643_v28 = vsel %vm1642_vm2, %v1639_v34, %v1641_v23 }
 0x2f9   :  { %v1636_v25 = vmul.f32 %v1631_v22, %v1627_v19  ;;  %v1637_v0 = vmul.f32 %v1635_v43, %v1626_v54  ;;  %v1654_v38 = vmul.f32 %v1652_v26, %v1644_v13  ;;  %v1653_v39 = vmul.f32 %v1648_v30, %v1643_v28 }
 0x2fb   :  { %v2245_v8 = vpack.c.bf16 %v1617_v6, %v1636_v25  ;;  %v2243_v35 = vpack.c.bf16 %v1618_v17, %v1637_v0 }
 0x2fd   :  { %2244 = vmatprep.subr.bf16.mxu0 %v2243_v35 }
 0x2fe   :  { %2246 = vmatpush1.bf16.msra.mxu0 %v2245_v8 }
 0x2ff   :  { %1680 = vmatprep.subr.mxu0 %v1654_v38 }
 0x302   :  { %1681 = vmatpush1.msra.mxu0 %v1653_v39 }
 0x303   :  { %1773 = vmatmul.mubr.msk.f32.vlgmr.msra.gmra.mrb[12].mxu0 %vm1669_vm3, %v1655_v51 }
 0x304   :  { %1746 = vmatprep.mubr.f32.mxu0 %v2304_v33 }
 0x307   :  { %1774 = vmatmul.mubr.msk.f32.gmra.mrb[14].mxu0 %vm1669_vm3, %v1656_v45 }
 0x308   :  { %v1662_v49 = vpop.permute.xlu0 %1661  ;;  %v1667_v32 = vpop.permute.xlu1 %1666 }
 0x3d6   :  { %v1742_v50 = vpop.f32.mrb[12].mxu0 }
 0x3d7   :  { %v1744_v46 = vpop.f32.mrb[13].mxu0  ;;  %v1743_v36 = vadd.f32 %v1742_v50, %v1662_v49 }
 0x3d8   :  { %v1745_v40 = vadd.f32 %v1744_v46, %v1662_v49 }
 0x3d9   :  { %1753 = vst [vmem:[#allocation2] sm:$0xff] %v1743_v36 }
 0x3da   :  { %1754 = vst [vmem:[#allocation2 + $0x8] sm:$0xff] %v1745_v40  ;;  %v1748_v58 = vpop.f32.mrb[14].mxu0 }
 0x3db   :  { %v1749_v27 = vadd.f32 %v1748_v58, %v1667_v32  ;;  %v1750_v60 = vpop.f32.mrb[15].mxu0 }
 0x3dc   :  { %v1751_v33 = vadd.f32 %v1750_v60, %v1667_v32 }
 0x3dd   :  { %1755 = vst [vmem:[#allocation2 + $0x10] sm:$0xff] %v1749_v27 }
 0x3de   :  { %1756 = vst [vmem:[#allocation2 + $0x18] sm:$0xff] %v1751_v33 }
 0x3df   :  { %2291 = shalt.err (!%p2288_p4)
}
 0x3e0   :  { %s2292_s20 = scalar_lea.hbm %s3057_s6, 512 }
 0x3e1   :  { %p2293_p5 = scmp.ne.s32.totalorder %s3057_s6, %s2292_s20  ;;  %p2296_p6 = scmp.lt.u32.totalorder %s2292_s20, %s3057_s6 }
 0x3e3   :  { %p2298_p7 = pnand %p2296_p6, %p2293_p5 }
 0x3e5   :  { %2301 = shalt.err (!%p2298_p7)
}
 0x3e6   :  { %s2309_s25 = smov 256   ;;  %s2310_s26 = smov 16  }
 0x3e7   :  { %1768 = dma.vmem_to_hbm [thread:$0]  %s1763_s17, 512, %s3057_s6, [#allocation3], %s2309_s25, %s2309_s25, %s2310_s26  }
 0x3e8   :  { %2302 = dma.done.wait [#allocation3], 512  }
 0x3e9   :  { %2303 = vsyncadd [#allocation3], 4294966784 }
 0x3ea   :  { %1772 = vsyncpa [#allocation3], 1 }

</bundles_post_ra>
